<compile_context>
chip_gen: v5e
topology: v5e:2x2
jax: 0.10.0
libtpu: 0.0.40
codegen_flags: <defaults>
</compile_context>

<pallas_src>
import functools

import jax
import jax.numpy as jnp
from jax.experimental import pallas as pl
from jax.experimental.pallas import tpu as pltpu


def _round_up(a, b):
    return (a + b - 1) // b * b


def _cdiv(a, b):
    return (a + b - 1) // b


def _accumulate(adj_ref, zk_ref, acc_ref, *, tk, xk_resident):
    """acc += bf16(adj int8 tile) @ z tile, f32 accumulation over the k axis."""
    k = pl.program_id(1)

    @pl.when(k == 0)
    def _():
        acc_ref[...] = jnp.zeros_like(acc_ref)

    if xk_resident:
        # z is fully VMEM-resident; slice the k-th contraction chunk in-kernel.
        start = pl.multiple_of(k * tk, 128)
        zk = zk_ref[pl.ds(start, tk), :]
    else:
        zk = zk_ref[...]

    # int8 -> bf16 upcast on the VPU (free: kernel is HBM-bound), bf16 MXU pass.
    acc_ref[...] += jnp.dot(adj_ref[...].astype(jnp.bfloat16), zk,
                            preferred_element_type=jnp.float32)


def sage_en_kernel_direct(adj_ref, zk_ref, xi_ref, ws_ref, wn_ref, out_ref,
                          acc_ref, *, ones_col, tk, xk_resident):
    _accumulate(adj_ref, zk_ref, acc_ref, tk=tk, xk_resident=xk_resident)

    @pl.when(pl.program_id(1) == pl.num_programs(1) - 1)
    def _():
        acc = acc_ref[...]                              # [sum_j adj*x | deg]
        deg = acc[:, ones_col:ones_col + 1]
        inv = pl.reciprocal(deg + 1.0, approx=True)     # EUP slot, frees VALU
        # The scaled ones/deg column is harmless: its weight rows are zero.
        neigh = acc * inv
        # Self/epilogue matmuls kept f32: per-row-tile only, negligible cost.
        h = (jnp.dot(xi_ref[...], ws_ref[...],
                     preferred_element_type=jnp.float32) +
             jnp.dot(neigh, wn_ref[...],
                     preferred_element_type=jnp.float32))
        # relu; dropout is identity at inference.
        # TODO(synk): training-mode dropout needs pltpu.prng_seed +
        # pltpu.stateful_bernoulli.
        out_ref[...] = jnp.maximum(h, 0.0).astype(out_ref.dtype)


def sage_en_kernel_reassoc(adj_ref, zk_ref, xi_ref, ws_ref, out_ref,
                           acc_ref, *, ones_col, h_pad, tk, xk_resident):
    _accumulate(adj_ref, zk_ref, acc_ref, tk=tk, xk_resident=xk_resident)

    @pl.when(pl.program_id(1) == pl.num_programs(1) - 1)
    def _():
        acc = acc_ref[...]                              # [sum_j adj*(x Wn) | deg]
        deg = acc[:, ones_col:ones_col + 1]
        inv = pl.reciprocal(deg + 1.0, approx=True)
        h = (jnp.dot(xi_ref[...], ws_ref[...],
                     preferred_element_type=jnp.float32) +
             acc[:, :h_pad] * inv)
        out_ref[...] = jnp.maximum(h, 0.0).astype(out_ref.dtype)


def sage_en_forward(x, edge_index, w_proj, *, tm=1024, tk=2048,
                    xk_resident=None, out_dtype=jnp.float32):
    """Sage_En forward.

    x:          [N, F] float32 node features
    edge_index: [2, E] int32 (row 0 = src, row 1 = dst)
    w_proj:     [2F, H] float32, stored [in, out] (== PyTorch proj.weight.T)
    returns:    [N, H] out_dtype
    """
    N, F = x.shape
    H = w_proj.shape[1]
    assert w_proj.shape[0] == 2 * F

    # ---- tile geometry -------------------------------------------------------
    SUB = 32                                     # int8 sublane tile granularity
    # "Tile-count-first" so zero-padding waste stays small; at least two row
    # tiles so v7x's second TensorCore gets work (harmless on v5e/v6e).
    nm_min = 2 if _round_up(N, SUB) >= 2 * SUB else 1
    nm = max(nm_min, _cdiv(N, max(tm, SUB)))
    TM = _round_up(_cdiv(N, nm), SUB)
    n_rows = nm * TM
    nk = max(1, _cdiv(N, max(tk, 128)))
    TK = _round_up(_cdiv(N, nk), 128)
    n_cols = nk * TK

    F_aug = _round_up(F + 1, 128)                # features + fused ones column
    F_pad = _round_up(F, 128)
    H_pad = _round_up(H, 128)                    # lane-dense output
    H_aug = _round_up(H + 1, 128)

    # Re-association: stream adj @ [x @ Wn | 1] when that operand is narrower
    # than [x | 1] (big win for wide features, neutral otherwise).
    reassoc = H_aug < F_aug

    # ---- wrapper glue (plain JAX) -------------------------------------------
    src = edge_index[0].astype(jnp.int32)
    dst = edge_index[1].astype(jnp.int32)
    # Dense adjacency built directly in the streamed dtype (int8, 0/1 exact).
    adj = jnp.zeros((n_rows, n_cols), jnp.int8).at[dst, src].set(1)

    w_self = w_proj[:F]
    w_neigh = w_proj[F:]

    if reassoc:
        zw = H_aug
        ones_col = H
        xw = x @ w_neigh                                        # (N, H) f32
        zk = (jnp.zeros((n_cols, zw), jnp.float32)
              .at[:N, :H].set(xw).at[:N, H].set(1.0)).astype(jnp.bfloat16)
        xi = jnp.zeros((n_rows, F_pad), jnp.float32).at[:N, :F].set(x)
        ws = jnp.zeros((F_pad, H_pad), jnp.float32).at[:F, :H].set(w_self)
        f_i = F_pad
    else:
        zw = F_aug
        ones_col = F
        x_aug = (jnp.zeros((max(n_rows, n_cols), F_aug), jnp.float32)
                 .at[:N, :F].set(x).at[:N, F].set(1.0))
        zk = x_aug[:n_cols].astype(jnp.bfloat16)   # streamed aggregation operand
        xi = x_aug[:n_rows]                        # self operand, f32
        ws = jnp.zeros((F_aug, H_pad), jnp.float32).at[:F, :H].set(w_self)
        wn = jnp.zeros((F_aug, H_pad), jnp.float32).at[:F, :H].set(w_neigh)
        f_i = F_aug

    # Keep z fully VMEM-resident (single DMA, no per-k re-fetch) when small.
    if xk_resident is None:
        xk_resident = n_cols * zw * 2 <= 4 * 1024 * 1024

    if xk_resident:
        zk_spec = pl.BlockSpec((n_cols, zw), lambda i, k: (0, 0))
    else:
        zk_spec = pl.BlockSpec((TK, zw), lambda i, k: (k, 0))

    in_specs = [
        pl.BlockSpec((TM, TK), lambda i, k: (i, k)),       # adj tile (int8)
        zk_spec,                                            # [z | 1] (bf16)
        pl.BlockSpec((TM, f_i), lambda i, k: (i, 0)),       # x (self, f32)
        pl.BlockSpec((f_i, H_pad), lambda i, k: (0, 0)),    # W_self (resident)
    ]
    operands = [adj, zk, xi, ws]

    if reassoc:
        kernel = functools.partial(
            sage_en_kernel_reassoc, ones_col=ones_col, h_pad=H_pad,
            tk=TK, xk_resident=xk_resident)
    else:
        in_specs.append(pl.BlockSpec((f_i, H_pad), lambda i, k: (0, 0)))
        operands.append(wn)
        kernel = functools.partial(
            sage_en_kernel_direct, ones_col=ones_col,
            tk=TK, xk_resident=xk_resident)

    out = pl.pallas_call(
        kernel,
        out_shape=jax.ShapeDtypeStruct((n_rows, H_pad), out_dtype),
        grid_spec=pltpu.PrefetchScalarGridSpec(
            num_scalar_prefetch=0,
            grid=(nm, nk),
            in_specs=in_specs,
            out_specs=pl.BlockSpec((TM, H_pad), lambda i, k: (i, 0)),
            scratch_shapes=[pltpu.VMEM((TM, zw), jnp.float32)],
        ),
        compiler_params=pltpu.CompilerParams(
            dimension_semantics=("parallel", "arbitrary"),
            vmem_limit_bytes=48 * 1024 * 1024,
        ),
    )(*operands)

    return out[:N, :H]


def sage_en_reference(x, edge_index, w_proj):
    """Pure-JAX reference of the Sage_En forward pass."""
    N = x.shape[0]
    src, dst = edge_index[0], edge_index[1]
    adj = jnp.zeros((N, N), jnp.float32).at[dst, src].set(1.0)
    deg = jnp.sum(adj, axis=1, keepdims=True) + 1.0
    neigh = (adj @ x) / deg
    h = jnp.concatenate([x, neigh], axis=-1) @ w_proj
    return jnp.maximum(h, 0.0)


def _make_graph(key, n, n_extra):
    ring_src = jnp.arange(n, dtype=jnp.int32)
    ring_dst = (ring_src + 1) % n
    extra_src = jax.random.randint(key, (n_extra,), 0, n, dtype=jnp.int32)
    extra_dst = jax.random.randint(jax.random.fold_in(key, 1), (n_extra,), 0, n,
                                   dtype=jnp.int32)
    return jnp.stack([jnp.concatenate([ring_src, extra_src]),
                      jnp.concatenate([ring_dst, extra_dst])], axis=0)


def _check(name, out, ref, rel_tol=2e-2):
    out = jnp.asarray(out, jnp.float32)
    scale = float(jnp.max(jnp.abs(ref))) + 1e-6
    err = float(jnp.max(jnp.abs(out - ref)))
    # bf16 aggregation stream + approx reciprocal -> small, scale-relative error.
    assert err <= rel_tol * scale + 1e-3, (
        f"{name}: max abs error {err} (scale {scale})")


if __name__ == "__main__":
    key = jax.random.PRNGKey(0)
    k1, k2, k3, k4, k5 = jax.random.split(key, 5)

    # --- case 1: small F/H (direct path), default adaptive tiles -------------
    N, F, H = 200, 8, 32
    x = jax.random.normal(k1, (N, F), jnp.float32)
    edge_index = _make_graph(k2, N, 64)
    # SAGEConv.proj: Linear(2F, H, bias=False), stored [in, out].
    w_proj = jax.random.normal(k3, (2 * F, H), jnp.float32)
    ref = sage_en_reference(x, edge_index, w_proj)

    out = sage_en_forward(x, edge_index, w_proj)
    jax.block_until_ready(out)
    assert out.shape == (N, H)
    _check("direct/default", out, ref)

    # --- case 2: small forced tiles, streamed z, bf16 output -----------------
    out2 = sage_en_forward(x, edge_index, w_proj, tm=64, tk=128,
                           xk_resident=False, out_dtype=jnp.bfloat16)
    jax.block_until_ready(out2)
    _check("direct/streamed", out2, ref)

    # --- case 3: wide features -> re-associated path -------------------------
    N3, F3, H3 = 160, 272, 32
    x3 = jax.random.normal(k4, (N3, F3), jnp.float32)
    edge3 = _make_graph(k5, N3, 48)
    w3 = jax.random.normal(jax.random.fold_in(k5, 7), (2 * F3, H3), jnp.float32)
    ref3 = sage_en_reference(x3, edge3, w3)

    out3 = sage_en_forward(x3, edge3, w3, tk=128)
    jax.block_until_ready(out3)
    assert out3.shape == (N3, H3)
    _check("reassoc", out3, ref3)

    print("KERNEL_OK")
</pallas_src>

<mosaic_0001>
module attributes {stable_mosaic.version = 11 : i64} {
  func.func @sage_en_kernel_direct(%arg0: i32, %arg1: i32, %arg2: memref<128x256xi8, #tpu.memory_space<vmem>>, %arg3: memref<256x128xbf16, #tpu.memory_space<vmem>>, %arg4: memref<128x128xf32, #tpu.memory_space<vmem>>, %arg5: memref<128x128xf32, #tpu.memory_space<vmem>>, %arg6: memref<128x128xf32, #tpu.memory_space<vmem>>, %arg7: memref<128x128xf32, #tpu.memory_space<vmem>>, %arg8: memref<128x128xf32, #tpu.memory_space<vmem>>) attributes {dimension_semantics = [#tpu.dimension_semantics<parallel>, #tpu.dimension_semantics<arbitrary>], iteration_bounds = array<i64: 2, 1>, scalar_prefetch = 0 : i64, scratch_operands = 1 : i64, tpu.core_type = #tpu.core_type<tc>, window_params = [{transform_indices = @transform_0, window_bounds = array<i64: 128, 256>}, {pipeline_mode = #tpu.pipeline_mode<synchronous>, transform_indices = @transform_1, window_bounds = array<i64: 256, 128>}, {transform_indices = @transform_2, window_bounds = array<i64: 128, 128>}, {pipeline_mode = #tpu.pipeline_mode<synchronous>, transform_indices = @transform_3, window_bounds = array<i64: 128, 128>}, {pipeline_mode = #tpu.pipeline_mode<synchronous>, transform_indices = @transform_4, window_bounds = array<i64: 128, 128>}, {transform_indices = @transform_5, window_bounds = array<i64: 128, 128>}]} {
    %c0_i32 = arith.constant 0 : i32
    %0 = arith.cmpi eq, %arg1, %c0_i32 : i32
    %1 = arith.extui %0 : i1 to i32
    %c0_i32_0 = arith.constant 0 : i32
    %2 = arith.cmpi ne, %1, %c0_i32_0 : i32
    scf.if %2 {
      %cst_9 = arith.constant 0.000000e+00 : f32
      %16 = vector.broadcast %cst_9 : f32 to vector<128x128xf32>
      %c0_10 = arith.constant 0 : index
      %c0_11 = arith.constant 0 : index
      %17 = vector.load %arg8[%c0_10, %c0_11] : memref<128x128xf32, #tpu.memory_space<vmem>>, vector<128x128xf32>
      tpu.vector_store %arg8[%c0_10, %c0_11], %16 {strides = array<i32>} : memref<128x128xf32, #tpu.memory_space<vmem>>, vector<128x128xf32>,
    } else {
    }
    %c256_i32 = arith.constant 256 : i32
    %3 = arith.muli %arg1, %c256_i32 : i32
    %4 = tpu.assume_multiple %3, 128 : i32
    %5 = arith.index_cast %4 : i32 to index
    %c0 = arith.constant 0 : index
    %6 = vector.load %arg3[%5, %c0] : memref<256x128xbf16, #tpu.memory_space<vmem>>, vector<256x128xbf16>
    %c0_1 = arith.constant 0 : index
    %c0_2 = arith.constant 0 : index
    %7 = vector.load %arg8[%c0_1, %c0_2] : memref<128x128xf32, #tpu.memory_space<vmem>>, vector<128x128xf32>
    %c0_3 = arith.constant 0 : index
    %c0_4 = arith.constant 0 : index
    %8 = vector.load %arg2[%c0_3, %c0_4] : memref<128x256xi8, #tpu.memory_space<vmem>>, vector<128x256xi8>
    %9 = arith.sitofp %8 : vector<128x256xi8> to vector<128x256xbf16>
    %cst = arith.constant dense<0.000000e+00> : vector<128x128xf32>
    %10 = tpu.matmul %9, %6, %cst {dimension_numbers = #tpu.dot_dimension_numbers<[1], [0], [0], [1], [0, 0, 1, 1], [], []>} : vector<128x256xbf16>, vector<256x128xbf16>, vector<128x128xf32> -> vector<128x128xf32>
    %11 = arith.addf %7, %10 : vector<128x128xf32>
    %c0_5 = arith.constant 0 : index
    %c0_6 = arith.constant 0 : index
    %12 = vector.load %arg8[%c0_5, %c0_6] : memref<128x128xf32, #tpu.memory_space<vmem>>, vector<128x128xf32>
    tpu.vector_store %arg8[%c0_5, %c0_6], %11 {strides = array<i32>} : memref<128x128xf32, #tpu.memory_space<vmem>>, vector<128x128xf32>,
    %c0_i32_7 = arith.constant 0 : i32
    %13 = arith.cmpi eq, %arg1, %c0_i32_7 : i32
    %14 = arith.extui %13 : i1 to i32
    %c0_i32_8 = arith.constant 0 : i32
    %15 = arith.cmpi ne, %14, %c0_i32_8 : i32
    scf.if %15 {
      %c0_9 = arith.constant 0 : index
      %c0_10 = arith.constant 0 : index
      %16 = vector.load %arg8[%c0_9, %c0_10] : memref<128x128xf32, #tpu.memory_space<vmem>>, vector<128x128xf32>
      %17 = vector.extract_strided_slice %16 {offsets = [0, 8], sizes = [128, 1], strides = [1, 1]} : vector<128x128xf32> to vector<128x1xf32>
      %cst_11 = arith.constant 1.000000e+00 : f32
      %18 = vector.broadcast %cst_11 : f32 to vector<128x1xf32>
      %19 = arith.addf %17, %18 : vector<128x1xf32>
      %20 = tpu.reciprocal %19 {approx = true} : vector<128x1xf32> -> vector<128x1xf32>
      %21 = vector.broadcast %20 : vector<128x1xf32> to vector<128x128xf32>
      %22 = arith.mulf %16, %21 : vector<128x128xf32>
      %c0_12 = arith.constant 0 : index
      %c0_13 = arith.constant 0 : index
      %23 = vector.load %arg4[%c0_12, %c0_13] : memref<128x128xf32, #tpu.memory_space<vmem>>, vector<128x128xf32>
      %c0_14 = arith.constant 0 : index
      %c0_15 = arith.constant 0 : index
      %24 = vector.load %arg5[%c0_14, %c0_15] : memref<128x128xf32, #tpu.memory_space<vmem>>, vector<128x128xf32>
      %cst_16 = arith.constant dense<0.000000e+00> : vector<128x128xf32>
      %25 = tpu.matmul %23, %24, %cst_16 {dimension_numbers = #tpu.dot_dimension_numbers<[1], [0], [0], [1], [0, 0, 1, 1], [], []>} : vector<128x128xf32>, vector<128x128xf32>, vector<128x128xf32> -> vector<128x128xf32>
      %c0_17 = arith.constant 0 : index
      %c0_18 = arith.constant 0 : index
      %26 = vector.load %arg6[%c0_17, %c0_18] : memref<128x128xf32, #tpu.memory_space<vmem>>, vector<128x128xf32>
      %cst_19 = arith.constant dense<0.000000e+00> : vector<128x128xf32>
      %27 = tpu.matmul %22, %26, %cst_19 {dimension_numbers = #tpu.dot_dimension_numbers<[1], [0], [0], [1], [0, 0, 1, 1], [], []>} : vector<128x128xf32>, vector<128x128xf32>, vector<128x128xf32> -> vector<128x128xf32>
      %28 = arith.addf %25, %27 : vector<128x128xf32>
      %cst_20 = arith.constant 0.000000e+00 : f32
      %29 = vector.broadcast %cst_20 : f32 to vector<128x128xf32>
      %30 = arith.maximumf %28, %29 : vector<128x128xf32>
      %c0_21 = arith.constant 0 : index
      %c0_22 = arith.constant 0 : index
      %31 = vector.load %arg7[%c0_21, %c0_22] : memref<128x128xf32, #tpu.memory_space<vmem>>, vector<128x128xf32>
      tpu.vector_store %arg7[%c0_21, %c0_22], %30 {strides = array<i32>} : memref<128x128xf32, #tpu.memory_space<vmem>>, vector<128x128xf32>,
    } else {
    }
    return
  }
  func.func @transform_0(%arg0: i32, %arg1: i32) -> (i32, i32) {
    %c0_i32 = arith.constant 0 : i32
    return %arg0, %arg1 : i32, i32
  }
  func.func @transform_1(%arg0: i32, %arg1: i32) -> (i32, i32) {
    %c0_i32 = arith.constant 0 : i32
    %c0_i32_0 = arith.constant 0 : i32
    %c0_i32_1 = arith.constant 0 : i32
    return %c0_i32, %c0_i32_0 : i32, i32
  }
  func.func @transform_2(%arg0: i32, %arg1: i32) -> (i32, i32) {
    %c0_i32 = arith.constant 0 : i32
    %c0_i32_0 = arith.constant 0 : i32
    return %arg0, %c0_i32 : i32, i32
  }
  func.func @transform_3(%arg0: i32, %arg1: i32) -> (i32, i32) {
    %c0_i32 = arith.constant 0 : i32
    %c0_i32_0 = arith.constant 0 : i32
    %c0_i32_1 = arith.constant 0 : i32
    return %c0_i32, %c0_i32_0 : i32, i32
  }
  func.func @transform_4(%arg0: i32, %arg1: i32) -> (i32, i32) {
    %c0_i32 = arith.constant 0 : i32
    %c0_i32_0 = arith.constant 0 : i32
    %c0_i32_1 = arith.constant 0 : i32
    return %c0_i32, %c0_i32_0 : i32, i32
  }
  func.func @transform_5(%arg0: i32, %arg1: i32) -> (i32, i32) {
    %c0_i32 = arith.constant 0 : i32
    %c0_i32_0 = arith.constant 0 : i32
    return %arg0, %c0_i32 : i32, i32
  }
}

</mosaic_0001>

<bundles_post_ra>
// kernel: tpu_custom_call.1
= control target key start
LH: loop header
LB: loop body
LE: loop exit
PB: predicated region body
PF: predicated region fallthrough
CT: control target
= control target key end

     0   :  { %s2102_s0 = inlined_call_operand.hbm [shape: s8[256,256], index: 0, kind: input, shape index: {}]   ;;  %s2103_s1 = inlined_call_operand.hbm [shape: bf16[256,128], index: 1, kind: input, shape index: {}]   ;;  %s2104_s2 = inlined_call_operand.hbm [shape: f32[256,128], index: 2, kind: input, shape index: {}]   ;;  %s2105_s3 = inlined_call_operand.hbm [shape: f32[128,128], index: 3, kind: input, shape index: {}]   ;;  %s2106_s4 = inlined_call_operand.hbm [shape: f32[128,128], index: 4, kind: input, shape index: {}]   ;;  %s2107_s5 = inlined_call_operand.hbm [shape: f32[256,128], index: 5, kind: output, shape index: {}]  }
   0x1   :  { %2111 = sst [smem:[#allocation23_spill]] %s2102_s0 }
   0x2   :  { %2112 = sst [smem:[#allocation24_spill]] %s2103_s1 }
   0x3   :  { %10 = vsyncpa [#allocation4], 0 }
   0x4   :  { %12 = vsyncpa [#allocation4 + $0x1], 0 }
   0x5   :  { %13 = vsyncpa [#allocation7], 0 }
   0x6   :  { %14 = vsyncpa [#allocation11], 0 }
   0x7   :  { %15 = vsyncpa [#allocation5], 0 }
   0x8   :  { %17 = vsyncpa [#allocation5 + $0x1], 0  ;;  %s1794_s18 = smov 0   ;;  %s1796_s19 = smov 0  }
   0x9   :  { %s1798_s20 = smov 0   ;;  %s1800_s21 = smov 0  }
   0xa   :  { %s1802_s22 = smov 0   ;;  %s1804_s23 = smov 0  }
   0xb LB: > { %2113 = sst [smem:[#allocation19_spill]] %s1738_s20  ;;  %s1825_s24 = sadd.s32 4294967295, %s1750_s23   ;;  %s1750_s23 = sphi %s1804_s23, %s23_s23   ;;  %s1746_s22 = sphi %s1802_s22, %s2133_s22   ;;  %s1742_s21 = sphi %s1800_s21, %s2132_s21   ;;  %s1738_s20 = sphi %s1798_s20, %s2128_s20   ;;  %s1734_s19 = sphi %s1796_s19, %s2131_s19   ;;  %s1730_s18 = sphi %s1794_s18, %s2130_s18  }
   0xc   : > { %s1251_s25 = sadd.s32 4294967294, %s1750_s23   ;;  %p57_p0 = scmp.ne.s32.totalorder %s1734_s19, %s1730_s18 }
   0xd   : > { %p58_p1 = scmp.eq.s32.totalorder %s1825_s24, 0  ;;  %p170_p2 = scmp.eq.s32.totalorder %s1825_s24, 1 }
   0xe   : > { %p176_p3 = scmp.eq.s32.totalorder %s1251_s25, 1  ;;  %p1252_p5 = scmp.ge.s32.totalorder %s1750_s23, 1 }
   0xf   : > { %p1834_p4 = por %p58_p1, %p57_p0  ;;  %p183_p7 = scmp.lt.s32.totalorder %s1750_s23, 3 }
  0x10   : > { %p1839_p6 = por %p176_p3, %p57_p0  ;;  %s2117_s1 = sld [smem:[#allocation24_spill]] }
  0x11   : > { %p1847_p8 = pnand %p1252_p5, %p183_p7  ;;  %s1752_s7 = smov [#allocation6]  }
  0x12   : > { %s2115_s27 = scalar_select %p1839_p6, 1, 0 }
  0x13   : > { %p1378_p9 = pneg %p1847_p8  ;;  %s196_s8 = sshll.u32 %s1752_s7, 4  ;;  %s197_s8 = int_to_ptr.vmem [resolvable:$true] %s196_s8 }
  0x14   : > { %2116 = sst [smem:[#allocation20_spill]] %s2115_s27  ;;  %p1256_p11 = scmp.ge.s32.totalorder %s1750_s23, 2 }
  0x15   : > { %p1855_p10 = pnand %p1378_p9, %p58_p1  ;;  %s1753_s10 = smov 64  }
  0x16   : > { %s194_s30 = sshll.u32 %s2117_s1, 4  ;;  %s1754_s11 = smov 4   ;;  %s195_s30 = int_to_ptr.hbm [resolvable:$true] %s194_s30 }
  0x17   : > { %1381 = dma.hbm_to_vmem [thread:$0]  (!%p1855_p10), %s195_s30, 2048, %s197_s8, [#allocation7], %s1753_s10, %s1753_s10, %s1754_s11  }
  0x18   : > { %s35_s12 = sadd.s32 1, %s1746_s22  ;;  %s44_s13 = sadd.s32 1, %s1738_s20 }
  0x19   : > { %p37_p12 = scmp.ge.s32.totalorder %s35_s12, 2  ;;  %p51_p13 = scmp.ne.s32.totalorder %s1738_s20, %s1734_s19 }
  0x1a   : > { %p52_p0 = scmp.eq.s32.totalorder %s1750_s23, 0  ;;  %p1402_p7 = scmp.lt.s32.totalorder %s1750_s23, 2 }
  0x1b   : > { %s2135_s12 = smov (%p37_p12, %s35_s12), 0  ;;  %p1875_p5 = por %p170_p2, %p51_p13 }
  0x1c   : > { %2120 = sst [smem:[#allocation21_spill]] %s2135_s12  ;;  %p1869_p3 = por %p52_p0, %p51_p13 }
  0x1d   : > { %s39_s16 = ssub.s32 %s1746_s22, %s2135_s12  ;;  %s238_s17 = sand.u32 1, %s1750_s23  }
  0x1e   : > { %p42_p9 = scmp.eq.s32.totalorder %s39_s16, 0  ;;  %s240_s25 = sand.u32 1, %s1738_s20  }
  0x1f   : > { %s1257_s29 = sshll.u32 %s240_s25, 6  ;;  %s1341_s30 = sshll.u32 %s1746_s22, 6 }
  0x20   : > { %s1885_s28 = scalar_select %p42_p9, %s1738_s20, %s44_s13  }
  0x21   : > { %s2124_s0 = sld [smem:[#allocation23_spill]]  ;;  %s242_s1 = scalar_lea.vmem [#allocation3], %s1257_s29 }
  0x22   : > { %2123 = sst [smem:[#allocation22_spill]] %s1885_s28  ;;  %s253_s27 = sshll.u32 %s242_s1, 4  ;;  %s254_s27 = int_to_ptr.vmem [resolvable:$true] %s253_s27 }
  0x23   : > { %p1895_p2 = pnand %p1402_p7, %p1869_p3  ;;  %s1261_s13 = sshll.u32 %s240_s25, 7 }
  0x24   : > { %s1899_s12 = scalar_lea.sflag [#allocation4], %s238_s17  ;;  %s1755_s28 = smov 256  }
  0x25   : > { %s1756_s7 = smov 16   ;;  %s267_s1 = scalar_lea.vmem [#allocation8], %s1261_s13 }
  0x26   : > { %s275_s29 = sshll.u32 %s267_s1, 4  ;;  %s208_s8 = sshll.u32 %s2105_s3, 4  ;;  %s209_s8 = int_to_ptr.hbm [resolvable:$true] %s208_s8  ;;  %s276_s29 = int_to_ptr.vmem [resolvable:$true] %s275_s29 }
  0x27   : > { %s250_s10 = scalar_lea.hbm %s2124_s0, %s1341_s30  ;;  %s1758_s17 = smov 128  }
  0x28   : > { %s251_s11 = sshll.u32 %s250_s10, 4  ;;  %s1757_s10 = smov [#allocation9]   ;;  %s252_s11 = int_to_ptr.hbm [resolvable:$true] %s251_s11 }
  0x29   : > { %1391 = dma.hbm_to_vmem [thread:$0]  (!%p1895_p2), %s252_s11, 1024, %s254_s27, %s1899_s12, %s1755_s28, %s1755_s28, %s1756_s7  }
  0x2a   : > { %s210_s0 = sshll.u32 %s1757_s10, 4  ;;  %s1759_s25 = smov 8   ;;  %s211_s0 = int_to_ptr.vmem [resolvable:$true] %s210_s0 }
  0x2b   : > { %1384 = dma.hbm_to_vmem [thread:$0]  (!%p1855_p10), %s209_s8, 2048, %s211_s0, [#allocation7], %s1758_s17, %s1758_s17, %s1759_s25  }
  0x2c   : > { %s222_s28 = sshll.u32 %s2106_s4, 4  ;;  %s1760_s11 = smov [#allocation10]   ;;  %s223_s28 = int_to_ptr.hbm [resolvable:$true] %s222_s28 }
  0x2d   : > { %s224_s13 = sshll.u32 %s1760_s11, 4  ;;  %s1342_s7 = sshll.u32 %s1746_s22, 7  ;;  %s225_s13 = int_to_ptr.vmem [resolvable:$true] %s224_s13 }
  0x2e   : > { %1387 = dma.hbm_to_vmem [thread:$0]  (!%p1855_p10), %s223_s28, 2048, %s225_s13, [#allocation11], %s1758_s17, %s1758_s17, %s1759_s25  }
  0x2f   : > { %s272_s30 = scalar_lea.hbm %s2104_s2, %s1342_s7  ;;  %287 = sbr.rel (%p1847_p8) target bundleno = 610 (0x262), region = 40 }
  0x30   : > { %s273_s10 = sshll.u32 %s272_s30, 4  ;;  %s289_s0 = sand.u32 (!%p1847_p8), 1, %s1825_s24   ;;  %s274_s10 = int_to_ptr.hbm [resolvable:$true] %s273_s10 }
  0x31   : > { %1394 = dma.hbm_to_vmem [thread:$0]  (!%p1895_p2), %s274_s10, 2048, %s276_s29, %s1899_s12, %s1758_s17, %s1758_s17, %s1759_s25  }
  0x32   : > { %s1925_s20 = sand.u32 (!%p1847_p8), 1, %s1734_s19   ;;  %s290_s8 = scalar_lea.sflag (!%p1847_p8), [#allocation4], %s289_s0 }
  0x33   : > { %s1265_s9 = sshll.u32 (!%p1847_p8), %s1925_s20, 6 }
  0x34   : > { %s1928_s27 = scalar_lea.vmem [#allocation3], %s1265_s9 }
  0x35   : > { %1705 = dma.done.wait (%p1834_p4), %s290_s8, 1024  }
  0x36   : > { %1707 = vsyncadd (%p1834_p4), %s290_s8, 4294966272 }
  0x37   : > { %1709 = dma.done.wait (%p58_p1), [#allocation7], 2048  }
  0x38   : > { %1711 = vsyncadd (%p58_p1), [#allocation7], 4294965248  ;;  %s1267_s6 = sshll.u32 %s1925_s20, 7 }
  0x39   : > { %s1941_s12 = scalar_lea.vmem [#allocation8], %s1267_s6 }
  0x3a   : > { %1713 = dma.done.wait (%p1834_p4), %s290_s8, 2048  }
  0x3b   : > { %1715 = vsyncadd (%p1834_p4), %s290_s8, 4294965248 }
  0x3c   : > { %1717 = dma.done.wait (%p58_p1), [#allocation7], 2048  }
  0x3d   : > { %1719 = vsyncadd (%p58_p1), [#allocation7], 4294965248 }
  0x3e   : > { %1721 = dma.done.wait (%p58_p1), [#allocation11], 2048  }
  0x3f   : > { %1723 = vsyncadd (%p58_p1), [#allocation11], 4294965248  ;;  %v1350_v0 = vld [vmem:[#allocation6 + $0x38] sm:$0xff]  ;;  %v1349_v2 = vld [vmem:[#allocation6 + $0x30] sm:$0xff]  ;;  %s2045_s24 = scalar_lea.vmem [#allocation12], %s1267_s6  ;;  %s1359_s26 = sshll.u32 %s1742_s21, 7 }
  0x40   : > { %v1358_v1 = vld [vmem:[#allocation6 + $0x78] sm:$0xff]  ;;  %612 = vmatpush.bf16.msra.mxu0 %v1350_v0  ;;  %v1357_v3 = vld [vmem:[#allocation6 + $0x70] sm:$0xff]  ;;  %v1348_v4 = vld [vmem:[#allocation6 + $0x28] sm:$0xff]  ;;  %s1111_s17 = scalar_lea.hbm %s2107_s5, %s1359_s26  ;;  %s1112_s25 = sshll.u32 %s2045_s24, 4  ;;  %s1113_s25 = int_to_ptr.vmem [resolvable:$true] %s1112_s25 }
  0x41   : > { %661 = vmatpush.bf16.msra.mxu1 %v1358_v1  ;;  %v1356_v5 = vld [vmem:[#allocation6 + $0x68] sm:$0xff]  ;;  %v1347_v6 = vld [vmem:[#allocation6 + $0x20] sm:$0xff]  ;;  %v1346_v8 = vld [vmem:[#allocation6 + $0x18] sm:$0xff]  ;;  %s1114_s28 = sshll.u32 %s1111_s17, 4  ;;  %s1100_s11 = scalar_lea.sflag [#allocation5], %s1925_s20  ;;  %s1115_s28 = int_to_ptr.hbm [resolvable:$true] %s1114_s28 }
  0x42   : > { %v1355_v7 = vld [vmem:[#allocation6 + $0x60] sm:$0xff]  ;;  %v1354_v9 = vld [vmem:[#allocation6 + $0x58] sm:$0xff]  ;;  %v1345_v10 = vld [vmem:[#allocation6 + $0x10] sm:$0xff]  ;;  %s1666_s13 = sshra.s32 %s1115_s28, 4  ;;  %s1672_s14 = scalar_lea.hbm %s2107_s5, 256  ;;  %s1667_s13 = int_to_ptr.hbm [resolvable:$true] %s1666_s13 }
  0x43   : > { %v1353_v11 = vld [vmem:[#allocation6 + $0x50] sm:$0xff]  ;;  %v428_v12 = vld [vmem:[%s1928_s27] sm:$0xff]  ;;  %v429_v13 = vld [vmem:[%s1928_s27 + $0x8] sm:$0xff]  ;;  %s1668_s21 = scalar_lea.hbm %s1667_s13, 128  ;;  %p1673_p10 = scmp.lt.s32.totalorder %s1667_s13, %s2107_s5 }
  0x44   : > { %613 = vmatpush.bf16.msra.mxu0 %v1349_v2  ;;  %v436_v14 = vunpack.c.0.s8 %v428_v12  ;;  %v438_v15 = vunpack.c.1.s8 %v428_v12  ;;  %v437_v16 = vunpack.c.0.s8 %v429_v13  ;;  %v439_v17 = vunpack.c.1.s8 %v429_v13  ;;  %v1344_v18 = vld [vmem:[#allocation6 + $0x8] sm:$0xff]  ;;  %v1343_v24 = vld [vmem:[#allocation6] sm:$0xff]  ;;  %v430_v38 = vld [vmem:[%s1928_s27 + $0x10] sm:$0xff]  ;;  %p1669_p1 = scmp.ne.s32.totalorder %s1667_s13, %s1668_s21  ;;  %p1674_p12 = scmp.lt.s32.totalorder %s1672_s14, %s1668_s21 }
  0x45   : > { %662 = vmatpush.bf16.msra.mxu1 %v1357_v3  ;;  %v1352_v19 = vld [vmem:[#allocation6 + $0x48] sm:$0xff]  ;;  %v1351_v25 = vld [vmem:[#allocation6 + $0x40] sm:$0xff]  ;;  %v440_v28 = vunpack.c.2.s8 %v428_v12  ;;  %v442_v29 = vunpack.c.3.s8 %v428_v12  ;;  %v441_v30 = vunpack.c.2.s8 %v429_v13  ;;  %v443_v31 = vunpack.c.3.s8 %v429_v13  ;;  %v431_v39 = vld [vmem:[%s1928_s27 + $0x18] sm:$0xff] }
  0x46   : > { %v468_v20 = vcvt.s32.f32 %v436_v14  ;;  %v470_v21 = vcvt.s32.f32 %v438_v15  ;;  %v469_v22 = vcvt.s32.f32 %v437_v16  ;;  %v471_v23 = vcvt.s32.f32 %v439_v17  ;;  %v432_v60 = vld [vmem:[%s1928_s27 + $0x20] sm:$0xff]  ;;  %v433_v61 = vld [vmem:[%s1928_s27 + $0x28] sm:$0xff]  ;;  %p1670_p4 = pnand %p1669_p1, %p1875_p5  ;;  %p1675_p13 = por %p1674_p12, %p1673_p10 }
  0x47   : > { %v472_v32 = vcvt.s32.f32 %v440_v28  ;;  %v474_v33 = vcvt.s32.f32 %v442_v29  ;;  %v473_v34 = vcvt.s32.f32 %v441_v30  ;;  %v475_v35 = vcvt.s32.f32 %v443_v31 }
  0x48   : > { %614 = vmatpush.bf16.msra.mxu0 %v1348_v4  ;;  %v500_v26 = vpack.c.bf16 %v470_v21, %v468_v20  ;;  %v501_v27 = vpack.c.bf16 %v471_v23, %v469_v22  ;;  %v444_v40 = vunpack.c.0.s8 %v430_v38  ;;  %v446_v41 = vunpack.c.1.s8 %v430_v38  ;;  %p1671_p8 = pneg %p1670_p4 }
  0x49   : > { %663 = vmatpush.bf16.msra.mxu1 %v1356_v5  ;;  %v502_v36 = vpack.c.bf16 %v474_v33, %v472_v32  ;;  %v503_v37 = vpack.c.bf16 %v475_v35, %v473_v34  ;;  %v445_v42 = vunpack.c.0.s8 %v431_v39  ;;  %v447_v43 = vunpack.c.1.s8 %v431_v39 }
  0x4a   : > { %v476_v44 = vcvt.s32.f32 %v444_v40  ;;  %v478_v45 = vcvt.s32.f32 %v446_v41  ;;  %v448_v50 = vunpack.c.2.s8 %v430_v38  ;;  %v450_v51 = vunpack.c.3.s8 %v430_v38  ;;  %p1676_p0 = pnand %p1675_p13, %p1671_p8 }
  0x4b   : > { %v477_v46 = vcvt.s32.f32 %v445_v42  ;;  %v479_v47 = vcvt.s32.f32 %v447_v43  ;;  %v449_v52 = vunpack.c.2.s8 %v431_v39  ;;  %v451_v53 = vunpack.c.3.s8 %v431_v39 }
  0x4c   : > { %615 = vmatpush.bf16.msra.mxu0 %v1347_v6  ;;  %v504_v48 = vpack.c.bf16 %v478_v45, %v476_v44  ;;  %v480_v54 = vcvt.s32.f32 %v448_v50  ;;  %v482_v55 = vcvt.s32.f32 %v450_v51  ;;  %v452_v62 = vunpack.c.0.s8 %v432_v60 }
  0x4d   : > { %664 = vmatpush.bf16.msra.mxu1 %v1355_v7  ;;  %v505_v49 = vpack.c.bf16 %v479_v47, %v477_v46  ;;  %v481_v56 = vcvt.s32.f32 %v449_v52  ;;  %v483_v57 = vcvt.s32.f32 %v451_v53  ;;  %v454_v63 = vunpack.c.1.s8 %v432_v60 }
  0x4e   : > { %v506_v58 = vpack.c.bf16 %v482_v55, %v480_v54  ;;  %v453_v0 = vunpack.c.0.s8 %v433_v61  ;;  %v455_v1 = vunpack.c.1.s8 %v433_v61  ;;  %v484_v2 = vcvt.s32.f32 %v452_v62 }
  0x4f   : > { %v507_v59 = vpack.c.bf16 %v483_v57, %v481_v56  ;;  %v486_v3 = vcvt.s32.f32 %v454_v63  ;;  %v1761_v38 = vmov 8  }
  0x50   : > { %616 = vmatpush.bf16.msra.mxu0 %v1346_v8  ;;  %v485_v4 = vcvt.s32.f32 %v453_v0  ;;  %v487_v5 = vcvt.s32.f32 %v455_v1  ;;  %v456_v8 = vunpack.c.2.s8 %v432_v60  ;;  %1467 = vset.pattern.permute.xlu0 %v1761_v38 }
  0x51   : > { %665 = vmatpush.bf16.msra.mxu1 %v1354_v9  ;;  %v508_v6 = vpack.c.bf16 %v486_v3, %v484_v2  ;;  %v458_v9 = vunpack.c.3.s8 %v432_v60  ;;  %1468 = vset.pattern.permute.xlu1 %v1761_v38 }
  0x52   : > { %v509_v7 = vpack.c.bf16 %v487_v5, %v485_v4  ;;  %v488_v12 = vcvt.s32.f32 %v456_v8  ;;  %1469 = vset.pattern.permute.xlu2 %v1761_v38  ;;  %v930_v38 = vld [vmem:[#allocation10 + $0x48] sm:$0xff] }
  0x53   : > { %v490_v13 = vcvt.s32.f32 %v458_v9 }
  0x54   : > { %617 = vmatpush.bf16.msra.mxu0 %v1345_v10  ;;  %v457_v10 = vunpack.c.2.s8 %v433_v61 }
  0x55   : > { %666 = vmatpush.bf16.msra.mxu1 %v1353_v11  ;;  %v459_v11 = vunpack.c.3.s8 %v433_v61  ;;  %v510_v16 = vpack.c.bf16 %v490_v13, %v488_v12 }
  0x56   : > { %v489_v14 = vcvt.s32.f32 %v457_v10 }
  0x57   : > { %v491_v15 = vcvt.s32.f32 %v459_v11 }
  0x58   : > { %618 = vmatpush.bf16.msra.mxu0 %v1344_v18  ;;  %v434_v18 = vld [vmem:[%s1928_s27 + $0x30] sm:$0xff] }
  0x59   : > { %667 = vmatpush.bf16.msra.mxu1 %v1352_v19  ;;  %v511_v17 = vpack.c.bf16 %v491_v15, %v489_v14  ;;  %v435_v19 = vld [vmem:[%s1928_s27 + $0x38] sm:$0xff]  ;;  %v460_v20 = vunpack.c.0.s8 %v434_v18  ;;  %v462_v21 = vunpack.c.1.s8 %v434_v18  ;;  %v464_v30 = vunpack.c.2.s8 %v434_v18 }
  0x5a   : > { %v461_v22 = vunpack.c.0.s8 %v435_v19  ;;  %v463_v23 = vunpack.c.1.s8 %v435_v19  ;;  %v466_v31 = vunpack.c.3.s8 %v434_v18  ;;  %v465_v32 = vunpack.c.2.s8 %v435_v19 }
  0x5b   : > { %v467_v33 = vunpack.c.3.s8 %v435_v19  ;;  %v496_v34 = vcvt.s32.f32 %v464_v30  ;;  %v936_v19 = vld [vmem:[#allocation10 + $0x78] sm:$0xff] }
  0x5c   : > { %619 = vmatpush.bf16.msra.mxu0 %v1343_v24  ;;  %v492_v24 = vcvt.s32.f32 %v460_v20  ;;  %v498_v35 = vcvt.s32.f32 %v466_v31  ;;  %v920_v20 = vld [vmem:[#allocation9 + $0x78] sm:$0xff]  ;;  %937 = vmatpush.msra.mxu2 %v936_v19 }
  0x5d   : > { %668 = vmatpush.bf16.msra.mxu1 %v1351_v25  ;;  %v494_v25 = vcvt.s32.f32 %v462_v21  ;;  %1002 = vmatpush.msra.mxu3 %v920_v20 }
  0x5e   : > { %v514_v39 = vpack.c.bf16 %v498_v35, %v496_v34 }
  0x5f   : > { %620 = vmatmul.bf16.vlgmr.msra.gmra.mxu0 %v500_v26  ;;  %v493_v26 = vcvt.s32.f32 %v461_v22  ;;  %v512_v28 = vpack.c.bf16 %v494_v25, %v492_v24  ;;  %v919_v24 = vld [vmem:[#allocation9 + $0x70] sm:$0xff]  ;;  %v934_v25 = vld [vmem:[#allocation10 + $0x68] sm:$0xff] }
  0x60   : > { %669 = vmatmul.bf16.vlgmr.msra.gmra.mxu1 %v501_v27  ;;  %v495_v27 = vcvt.s32.f32 %v463_v23  ;;  %v935_v23 = vld [vmem:[#allocation10 + $0x70] sm:$0xff]  ;;  %1003 = vmatpush.msra.mxu3 %v919_v24 }
  0x61   : > { %938 = vmatpush.msra.mxu2 %v935_v23 }
  0x62   : > { %v513_v29 = vpack.c.bf16 %v495_v27, %v493_v26  ;;  %v918_v26 = vld [vmem:[#allocation9 + $0x68] sm:$0xff]  ;;  %v933_v27 = vld [vmem:[#allocation10 + $0x60] sm:$0xff] }
  0x63   : > { %939 = vmatpush.msra.mxu2 %v934_v25  ;;  %1004 = vmatpush.msra.mxu3 %v918_v26 }
  0x65   : > { %940 = vmatpush.msra.mxu2 %v933_v27  ;;  %v891_v27 = vld [vmem:[%s1941_s12 + $0x10] sm:$0xff] }
  0x6f   : > { %625 = vmatmul.bf16.gmra.mxu0 %v502_v36  ;;  %v497_v36 = vcvt.s32.f32 %v465_v32  ;;  %v932_v32 = vld [vmem:[#allocation10 + $0x58] sm:$0xff] }
  0x70   : > { %674 = vmatmul.bf16.gmra.mxu1 %v503_v37  ;;  %v499_v37 = vcvt.s32.f32 %v467_v33  ;;  %v916_v33 = vld [vmem:[#allocation9 + $0x58] sm:$0xff]  ;;  %941 = vmatpush.msra.mxu2 %v932_v32 }
  0x72   : > { %v515_v40 = vpack.c.bf16 %v499_v37, %v497_v36  ;;  %v931_v36 = vld [vmem:[#allocation10 + $0x50] sm:$0xff] }
  0x73   : > { %v915_v37 = vld [vmem:[#allocation9 + $0x50] sm:$0xff]  ;;  %942 = vmatpush.msra.mxu2 %v931_v36 }
  0x75   : > { %943 = vmatpush.msra.mxu2 %v930_v38 }
  0x7f   : > { %630 = vmatmul.bf16.gmra.mxu0 %v504_v48 }
  0x80   : > { %679 = vmatmul.bf16.gmra.mxu1 %v505_v49 }
  0x8f   : > { %635 = vmatmul.bf16.gmra.mxu0 %v506_v58 }
  0x90   : > { %684 = vmatmul.bf16.gmra.mxu1 %v507_v59 }
  0x9f   : > { %640 = vmatmul.bf16.gmra.mxu0 %v508_v6 }
  0xa0   : > { %689 = vmatmul.bf16.gmra.mxu1 %v509_v7 }
  0xaf   : > { %645 = vmatmul.bf16.gmra.mxu0 %v510_v16 }
  0xb0   : > { %694 = vmatmul.bf16.gmra.mxu1 %v511_v17 }
  0xbf   : > { %650 = vmatmul.bf16.gmra.mxu0 %v512_v28  ;;  %v917_v28 = vld [vmem:[#allocation9 + $0x60] sm:$0xff] }
  0xc0   : > { %699 = vmatmul.bf16.gmra.mxu1 %v513_v29  ;;  %1005 = vmatpush.msra.mxu3 %v917_v28 }
  0xc2   : > { %1006 = vmatpush.msra.mxu3 %v916_v33 }
  0xc4   : > { %1007 = vmatpush.msra.mxu3 %v915_v37 }
  0xcf   : > { %655 = vmatmul.bf16.gmra.mxu0 %v514_v39  ;;  %v914_v39 = vld [vmem:[#allocation9 + $0x48] sm:$0xff] }
  0xd0   : > { %704 = vmatmul.bf16.gmra.mxu1 %v515_v40  ;;  %1008 = vmatpush.msra.mxu3 %v914_v39  ;;  %v929_v40 = vld [vmem:[#allocation10 + $0x40] sm:$0xff] }
  0xd1   : > { %944 = vmatpush.msra.mxu2 %v929_v40  ;;  %v893_v40 = vld [vmem:[%s1941_s12 + $0x20] sm:$0xff] }
  0xdc   : > { %v621_v41 = vpop.f32.mrf.mxu0 }
  0xdd   : > { %v670_v42 = vpop.f32.mrf.mxu1 }
  0xde   : > { %v1963_v43 = vadd.f32 %v670_v42, %v621_v41  ;;  %v913_v41 = vld [vmem:[#allocation9 + $0x40] sm:$0xff] }
  0xdf   : > { %1009 = vmatpush.msra.mxu3 %v913_v41 }
  0xe0   : > { %v761_v44 = vadd.f32 1.0, %v1963_v43 }
  0xe2   : > { %1470 = vrcp.f32 %v761_v44 }
  0xe4   : > { %v623_v45 = vpop.f32.mrf.mxu0 }
  0xe5   : > { %v672_v46 = vpop.f32.mrf.mxu1 }
  0xe6   : > { %v1966_v47 = vadd.f32 %v672_v46, %v623_v45  ;;  %v928_v46 = vld [vmem:[#allocation10 + $0x38] sm:$0xff] }
  0xe7   : > { %945 = vmatpush.msra.mxu2 %v928_v46  ;;  %v894_v46 = vld [vmem:[%s1941_s12 + $0x28] sm:$0xff] }
  0xe8   : > { %v1471_v48 = vpop.eup %1470  ;;  %v762_v49 = vadd.f32 1.0, %v1966_v47 }
  0xe9   : > { %795 = vperm.xlu0 %1467, %v1471_v48   ;;  %v912_v48 = vld [vmem:[#allocation9 + $0x38] sm:$0xff] }
  0xea   : > { %1472 = vrcp.f32 %v762_v49  ;;  %1010 = vmatpush.msra.mxu3 %v912_v48 }
  0xec   : > { %v626_v50 = vpop.f32.mrf.mxu0 }
  0xed   : > { %v675_v51 = vpop.f32.mrf.mxu1 }
  0xee   : > { %v1969_v52 = vadd.f32 %v675_v51, %v626_v50  ;;  %v927_v51 = vld [vmem:[#allocation10 + $0x30] sm:$0xff] }
  0xef   : > { %946 = vmatpush.msra.mxu2 %v927_v51 }
  0xf0   : > { %v1473_v53 = vpop.eup %1472  ;;  %v763_v54 = vadd.f32 1.0, %v1969_v52 }
  0xf1   : > { %800 = vperm.xlu0 %1467, %v1473_v53   ;;  %v911_v53 = vld [vmem:[#allocation9 + $0x30] sm:$0xff] }
  0xf2   : > { %1474 = vrcp.f32 %v763_v54  ;;  %1011 = vmatpush.msra.mxu3 %v911_v53  ;;  %v926_v54 = vld [vmem:[#allocation10 + $0x28] sm:$0xff]  ;;  %v896_v53 = vld [vmem:[%s1941_s12 + $0x38] sm:$0xff] }
  0xf3   : > { %947 = vmatpush.msra.mxu2 %v926_v54 }
  0xf4   : > { %v628_v55 = vpop.f32.mrf.mxu0 }
  0xf5   : > { %v677_v56 = vpop.f32.mrf.mxu1 }
  0xf6   : > { %v1972_v57 = vadd.f32 %v677_v56, %v628_v55  ;;  %v910_v55 = vld [vmem:[#allocation9 + $0x28] sm:$0xff]  ;;  %v925_v56 = vld [vmem:[#allocation10 + $0x20] sm:$0xff] }
  0xf7   : > { %1012 = vmatpush.msra.mxu3 %v910_v55  ;;  %948 = vmatpush.msra.mxu2 %v925_v56  ;;  %v897_v55 = vld [vmem:[%s1941_s12 + $0x40] sm:$0xff] }
  0xf8   : > { %v1475_v58 = vpop.eup %1474  ;;  %v764_v59 = vadd.f32 1.0, %v1972_v57 }
  0xf9   : > { %805 = vperm.xlu1 %1468, %v1475_v58   ;;  %v909_v58 = vld [vmem:[#allocation9 + $0x20] sm:$0xff] }
  0xfa   : > { %1476 = vrcp.f32 %v764_v59  ;;  %1013 = vmatpush.msra.mxu3 %v909_v58  ;;  %v898_v58 = vld [vmem:[%s1941_s12 + $0x48] sm:$0xff] }
  0xfc   : > { %v631_v60 = vpop.f32.mrf.mxu0 }
  0xfd   : > { %v680_v61 = vpop.f32.mrf.mxu1 }
  0xfe   : > { %v1975_v62 = vadd.f32 %v680_v61, %v631_v60 }
 0x100   : > { %v1477_v63 = vpop.eup %1476  ;;  %v765_v0 = vadd.f32 1.0, %v1975_v62 }
 0x101   : > { %810 = vperm.xlu1 %1468, %v1477_v63   ;;  %v924_v63 = vld [vmem:[#allocation10 + $0x18] sm:$0xff] }
 0x102   : > { %1478 = vrcp.f32 %v765_v0  ;;  %v908_v0 = vld [vmem:[#allocation9 + $0x18] sm:$0xff]  ;;  %949 = vmatpush.msra.mxu2 %v924_v63 }
 0x103   : > { %1014 = vmatpush.msra.mxu3 %v908_v0  ;;  %v900_v0 = vld [vmem:[%s1941_s12 + $0x58] sm:$0xff] }
 0x104   : > { %v633_v1 = vpop.f32.mrf.mxu0 }
 0x105   : > { %v682_v2 = vpop.f32.mrf.mxu1 }
 0x106   : > { %v1978_v3 = vadd.f32 %v682_v2, %v633_v1 }
 0x108   : > { %v1479_v4 = vpop.eup %1478  ;;  %v766_v5 = vadd.f32 1.0, %v1978_v3 }
 0x109   : > { %815 = vperm.xlu2 %1469, %v1479_v4   ;;  %v923_v4 = vld [vmem:[#allocation10 + $0x10] sm:$0xff] }
 0x10a   : > { %1480 = vrcp.f32 %v766_v5  ;;  %v907_v5 = vld [vmem:[#allocation9 + $0x10] sm:$0xff]  ;;  %950 = vmatpush.msra.mxu2 %v923_v4 }
 0x10b   : > { %1015 = vmatpush.msra.mxu3 %v907_v5  ;;  %v902_v5 = vld [vmem:[%s1941_s12 + $0x68] sm:$0xff] }
 0x10c   : > { %v636_v6 = vpop.f32.mrf.mxu0 }
 0x10d   : > { %v685_v7 = vpop.f32.mrf.mxu1 }
 0x10e   : > { %v1981_v8 = vadd.f32 %v685_v7, %v636_v6  ;;  %v922_v6 = vld [vmem:[#allocation10 + $0x8] sm:$0xff] }
 0x10f   : > { %v906_v7 = vld [vmem:[#allocation9 + $0x8] sm:$0xff]  ;;  %951 = vmatpush.msra.mxu2 %v922_v6 }
 0x110   : > { %v1481_v9 = vpop.eup %1480  ;;  %v767_v10 = vadd.f32 1.0, %v1981_v8  ;;  %1016 = vmatpush.msra.mxu3 %v906_v7  ;;  %v903_v7 = vld [vmem:[%s1941_s12 + $0x70] sm:$0xff] }
 0x111   : > { %820 = vperm.xlu2 %1469, %v1481_v9   ;;  %v921_v9 = vld [vmem:[#allocation10] sm:$0xff] }
 0x112   : > { %1482 = vrcp.f32 %v767_v10  ;;  %v905_v10 = vld [vmem:[#allocation9] sm:$0xff]  ;;  %952 = vmatpush.msra.mxu2 %v921_v9 }
 0x113   : > { %1017 = vmatpush.msra.mxu3 %v905_v10 }
 0x114   : > { %v638_v11 = vpop.f32.mrf.mxu0 }
 0x115   : > { %v687_v12 = vpop.f32.mrf.mxu1 }
 0x116   : > { %v1984_v13 = vadd.f32 %v687_v12, %v638_v11 }
 0x118   : > { %v1483_v14 = vpop.eup %1482  ;;  %v768_v15 = vadd.f32 1.0, %v1984_v13 }
 0x119   : > { %825 = vperm.xlu0 %1467, %v1483_v14   ;;  %v889_v14 = vld [vmem:[%s1941_s12] sm:$0xff] }
 0x11a   : > { %1484 = vrcp.f32 %v768_v15  ;;  %1018 = vmatmul.f32.vlgmr.msra.gmra.mxu3 %v889_v14 }
 0x11c   : > { %v641_v16 = vpop.f32.mrf.mxu0 }
 0x11d   : > { %v690_v17 = vpop.f32.mrf.mxu1 }
 0x11e   : > { %v1987_v18 = vadd.f32 %v690_v17, %v641_v16 }
 0x120   : > { %v1485_v21 = vpop.eup %1484  ;;  %v769_v22 = vadd.f32 1.0, %v1987_v18 }
 0x121   : > { %830 = vperm.xlu1 %1468, %v1485_v21   ;;  %v890_v21 = vld [vmem:[%s1941_s12 + $0x8] sm:$0xff] }
 0x122   : > { %1486 = vrcp.f32 %v769_v22  ;;  %1021 = vmatmul.f32.gmra.mxu3 %v890_v21 }
 0x124   : > { %v643_v29 = vpop.f32.mrf.mxu0 }
 0x125   : > { %v692_v30 = vpop.f32.mrf.mxu1 }
 0x126   : > { %v1990_v31 = vadd.f32 %v692_v30, %v643_v29 }
 0x128   : > { %v1487_v34 = vpop.eup %1486  ;;  %v770_v35 = vadd.f32 1.0, %v1990_v31 }
 0x129   : > { %835 = vperm.xlu2 %1469, %v1487_v34   ;;  %v892_v34 = vld [vmem:[%s1941_s12 + $0x18] sm:$0xff] }
 0x12a   : > { %1488 = vrcp.f32 %v770_v35  ;;  %1024 = vmatmul.f32.gmra.mxu3 %v891_v27 }
 0x12c   : > { %v646_v42 = vpop.f32.mrf.mxu0 }
 0x12d   : > { %v695_v44 = vpop.f32.mrf.mxu1 }
 0x12e   : > { %v1993_v45 = vadd.f32 %v695_v44, %v646_v42 }
 0x130   : > { %v1489_v49 = vpop.eup %1488  ;;  %v771_v50 = vadd.f32 1.0, %v1993_v45 }
 0x131   : > { %840 = vperm.xlu0 %1467, %v1489_v49  }
 0x132   : > { %1490 = vrcp.f32 %v771_v50  ;;  %1027 = vmatmul.f32.gmra.mxu3 %v892_v34  ;;  %v895_v50 = vld [vmem:[%s1941_s12 + $0x30] sm:$0xff] }
 0x134   : > { %v648_v59 = vpop.f32.mrf.mxu0 }
 0x135   : > { %v697_v60 = vpop.f32.mrf.mxu1 }
 0x136   : > { %v1996_v61 = vadd.f32 %v697_v60, %v648_v59  ;;  %v899_v60 = vld [vmem:[%s1941_s12 + $0x50] sm:$0xff] }
 0x138   : > { %v1491_v1 = vpop.eup %1490  ;;  %v772_v2 = vadd.f32 1.0, %v1996_v61 }
 0x139   : > { %845 = vperm.xlu1 %1468, %v1491_v1  }
 0x13a   : > { %1492 = vrcp.f32 %v772_v2  ;;  %1030 = vmatmul.f32.gmra.mxu3 %v893_v40  ;;  %v901_v2 = vld [vmem:[%s1941_s12 + $0x60] sm:$0xff] }
 0x13c   : > { %v651_v11 = vpop.f32.mrf.mxu0 }
 0x13d   : > { %v700_v12 = vpop.f32.mrf.mxu1 }
 0x13e   : > { %v2000_v15 = vadd.f32 %v700_v12, %v651_v11 }
 0x140   : > { %v1493_v16 = vpop.eup %1492  ;;  %v773_v17 = vadd.f32 1.0, %v2000_v15 }
 0x141   : > { %850 = vperm.xlu2 %1469, %v1493_v16  }
 0x142   : > { %1494 = vrcp.f32 %v773_v17  ;;  %1033 = vmatmul.f32.gmra.mxu3 %v894_v46 }
 0x144   : > { %v653_v19 = vpop.f32.mrf.mxu0 }
 0x145   : > { %v702_v20 = vpop.f32.mrf.mxu1 }
 0x146   : > { %v2004_v22 = vadd.f32 %v702_v20, %v653_v19 }
 0x148   : > { %v1495_v23 = vpop.eup %1494  ;;  %v774_v24 = vadd.f32 1.0, %v2004_v22 }
 0x149   : > { %855 = vperm.xlu0 %1467, %v1495_v23  }
 0x14a   : > { %1496 = vrcp.f32 %v774_v24  ;;  %1036 = vmatmul.f32.gmra.mxu3 %v895_v50 }
 0x14c   : > { %v656_v25 = vpop.f32.mrf.mxu0 }
 0x14d   : > { %v705_v26 = vpop.f32.mrf.mxu1 }
 0x14e   : > { %v2008_v28 = vadd.f32 %v705_v26, %v656_v25 }
 0x150   : > { %v1497_v29 = vpop.eup %1496  ;;  %v775_v30 = vadd.f32 1.0, %v2008_v28 }
 0x151   : > { %860 = vperm.xlu1 %1468, %v1497_v29  }
 0x152   : > { %1498 = vrcp.f32 %v775_v30  ;;  %1039 = vmatmul.f32.gmra.mxu3 %v896_v53 }
 0x154   : > { %v658_v32 = vpop.f32.mrf.mxu0 }
 0x155   : > { %v707_v33 = vpop.f32.mrf.mxu1 }
 0x156   : > { %v2012_v35 = vadd.f32 %v707_v33, %v658_v32 }
 0x158   : > { %v1499_v36 = vpop.eup %1498  ;;  %v776_v37 = vadd.f32 1.0, %v2012_v35 }
 0x159   : > { %865 = vperm.xlu2 %1469, %v1499_v36  }
 0x15a   : > { %1500 = vrcp.f32 %v776_v37  ;;  %1042 = vmatmul.f32.gmra.mxu3 %v897_v55 }
 0x15b   : > { %v796_v38 = vpop.permute.xlu0 %795 }
 0x15c   : > { %v873_v39 = vmul.f32 %v796_v38, %v1963_v43 }
 0x15e   : > { %953 = vmatmul.f32.vlgmr.msra.gmra.mxu2 %v873_v39 }
 0x160   : > { %v1501_v41 = vpop.eup %1500 }
 0x161   : > { %870 = vperm.xlu0 %1467, %v1501_v41  }
 0x162   : > { %1045 = vmatmul.f32.gmra.mxu3 %v898_v58 }
 0x163   : > { %v801_v42 = vpop.permute.xlu0 %800  ;;  %v816_v54 = vpop.permute.xlu2 %815 }
 0x164   : > { %v874_v44 = vmul.f32 %v801_v42, %v1966_v47  ;;  %v877_v47 = vmul.f32 %v816_v54, %v1975_v62 }
 0x166   : > { %956 = vmatmul.f32.gmra.mxu2 %v874_v44 }
 0x16a   : > { %1048 = vmatmul.f32.gmra.mxu3 %v899_v60 }
 0x16b   : > { %v806_v48 = vpop.permute.xlu1 %805  ;;  %v821_v56 = vpop.permute.xlu2 %820 }
 0x16c   : > { %v875_v49 = vmul.f32 %v806_v48, %v1969_v52  ;;  %v878_v52 = vmul.f32 %v821_v56, %v1978_v3 }
 0x16e   : > { %959 = vmatmul.f32.gmra.mxu2 %v875_v49 }
 0x172   : > { %1051 = vmatmul.f32.gmra.mxu3 %v900_v0 }
 0x173   : > { %v811_v43 = vpop.permute.xlu1 %810 }
 0x174   : > { %v876_v51 = vmul.f32 %v811_v43, %v1972_v57 }
 0x176   : > { %962 = vmatmul.f32.gmra.mxu2 %v876_v51 }
 0x17a   : > { %1054 = vmatmul.f32.gmra.mxu3 %v901_v2 }
 0x17e   : > { %965 = vmatmul.f32.gmra.mxu2 %v877_v47 }
 0x182   : > { %1057 = vmatmul.f32.gmra.mxu3 %v902_v5 }
 0x183   : > { %v836_v1 = vpop.permute.xlu2 %835 }
 0x184   : > { %v881_v3 = vmul.f32 %v836_v1, %v1987_v18  ;;  %v904_v18 = vld [vmem:[%s1941_s12 + $0x78] sm:$0xff] }
 0x186   : > { %968 = vmatmul.f32.gmra.mxu2 %v878_v52 }
 0x18a   : > { %1060 = vmatmul.f32.gmra.mxu3 %v903_v7 }
 0x18b   : > { %v826_v59 = vpop.permute.xlu0 %825 }
 0x18c   : > { %v879_v57 = vmul.f32 %v826_v59, %v1981_v8 }
 0x18e   : > { %971 = vmatmul.f32.gmra.mxu2 %v879_v57 }
 0x192   : > { %1063 = vmatmul.f32.gmra.mxu3 %v904_v18 }
 0x193   : > { %v831_v63 = vpop.permute.xlu1 %830 }
 0x194   : > { %v880_v62 = vmul.f32 %v831_v63, %v1984_v13 }
 0x196   : > { %974 = vmatmul.f32.gmra.mxu2 %v880_v62 }
 0x19b   : > { %v851_v9 = vpop.permute.xlu2 %850 }
 0x19c   : > { %v884_v10 = vmul.f32 %v851_v9, %v1996_v61 }
 0x19e   : > { %977 = vmatmul.f32.gmra.mxu2 %v881_v3 }
 0x1a3   : > { %v841_v4 = vpop.permute.xlu0 %840 }
 0x1a4   : > { %v882_v8 = vmul.f32 %v841_v4, %v1990_v31  ;;  %v1019_v31 = vpop.f32.mrf.mxu3 }
 0x1a6   : > { %980 = vmatmul.f32.gmra.mxu2 %v882_v8 }
 0x1ab   : > { %v846_v6 = vpop.permute.xlu1 %845 }
 0x1ac   : > { %v883_v13 = vmul.f32 %v846_v6, %v1993_v45  ;;  %v1022_v17 = vpop.f32.mrf.mxu3 }
 0x1ae   : > { %983 = vmatmul.f32.gmra.mxu2 %v883_v13 }
 0x1b3   : > { %v866_v45 = vpop.permute.xlu2 %865 }
 0x1b4   : > { %v887_v19 = vmul.f32 %v866_v45, %v2008_v28  ;;  %v1025_v21 = vpop.f32.mrf.mxu3 }
 0x1b6   : > { %986 = vmatmul.f32.gmra.mxu2 %v884_v10 }
 0x1bb   : > { %v856_v11 = vpop.permute.xlu0 %855 }
 0x1bc   : > { %v885_v12 = vmul.f32 %v856_v11, %v2000_v15  ;;  %v1028_v23 = vpop.f32.mrf.mxu3 }
 0x1be   : > { %989 = vmatmul.f32.gmra.mxu2 %v885_v12 }
 0x1c3   : > { %v861_v14 = vpop.permute.xlu1 %860 }
 0x1c4   : > { %v886_v16 = vmul.f32 %v861_v14, %v2004_v22  ;;  %v1031_v26 = vpop.f32.mrf.mxu3 }
 0x1c6   : > { %992 = vmatmul.f32.gmra.mxu2 %v886_v16 }
 0x1cc   : > { %v1034_v32 = vpop.f32.mrf.mxu3 }
 0x1ce   : > { %995 = vmatmul.f32.gmra.mxu2 %v887_v19 }
 0x1d3   : > { %v871_v20 = vpop.permute.xlu0 %870 }
 0x1d4   : > { %v888_v61 = vmul.f32 %v871_v20, %v2012_v35  ;;  %v1037_v37 = vpop.f32.mrf.mxu3 }
 0x1d6   : > { %998 = vmatmul.f32.gmra.mxu2 %v888_v61 }
 0x1dc   : > { %v1040_v41 = vpop.f32.mrf.mxu3 }
 0x1e1   : > { %v954_v24 = vpop.f32.mrf.mxu2 }
 0x1e2   : > { %v1020_v15 = vadd.f32 %v1019_v31, %v954_v24 }
 0x1e4   : > { %v1067_v25 = vmax.f32 %v1020_v15, 0.0  ;;  %v1043_v49 = vpop.f32.mrf.mxu3 }
 0x1e6   : > { %1083 = vst [vmem:[%s2045_s24] sm:$0xff] %v1067_v25 }
 0x1e9   : > { %v957_v22 = vpop.f32.mrf.mxu2 }
 0x1ea   : > { %v1023_v27 = vadd.f32 %v1022_v17, %v957_v22 }
 0x1ec   : > { %v1068_v28 = vmax.f32 %v1023_v27, 0.0  ;;  %v1046_v54 = vpop.f32.mrf.mxu3 }
 0x1ee   : > { %1084 = vst [vmem:[%s2045_s24 + $0x8] sm:$0xff] %v1068_v28 }
 0x1f1   : > { %v960_v29 = vpop.f32.mrf.mxu2 }
 0x1f2   : > { %v1026_v30 = vadd.f32 %v1025_v21, %v960_v29 }
 0x1f4   : > { %v1069_v33 = vmax.f32 %v1026_v30, 0.0  ;;  %v1049_v58 = vpop.f32.mrf.mxu3 }
 0x1f6   : > { %1085 = vst [vmem:[%s2045_s24 + $0x10] sm:$0xff] %v1069_v33 }
 0x1f9   : > { %v963_v34 = vpop.f32.mrf.mxu2 }
 0x1fa   : > { %v1029_v35 = vadd.f32 %v1028_v23, %v963_v34 }
 0x1fc   : > { %v1070_v36 = vmax.f32 %v1029_v35, 0.0  ;;  %v1052_v63 = vpop.f32.mrf.mxu3 }
 0x1fe   : > { %1086 = vst [vmem:[%s2045_s24 + $0x18] sm:$0xff] %v1070_v36 }
 0x201   : > { %v966_v38 = vpop.f32.mrf.mxu2 }
 0x202   : > { %v1032_v39 = vadd.f32 %v1031_v26, %v966_v38 }
 0x204   : > { %v1071_v40 = vmax.f32 %v1032_v39, 0.0  ;;  %v1055_v2 = vpop.f32.mrf.mxu3 }
 0x206   : > { %1087 = vst [vmem:[%s2045_s24 + $0x20] sm:$0xff] %v1071_v40 }
 0x209   : > { %v969_v42 = vpop.f32.mrf.mxu2 }
 0x20a   : > { %v1035_v44 = vadd.f32 %v1034_v32, %v969_v42 }
 0x20c   : > { %v1072_v46 = vmax.f32 %v1035_v44, 0.0  ;;  %v1058_v13 = vpop.f32.mrf.mxu3 }
 0x20e   : > { %1088 = vst [vmem:[%s2045_s24 + $0x28] sm:$0xff] %v1072_v46 }
 0x211   : > { %v972_v48 = vpop.f32.mrf.mxu2 }
 0x212   : > { %v1038_v50 = vadd.f32 %v1037_v37, %v972_v48 }
 0x214   : > { %v1073_v43 = vmax.f32 %v1038_v50, 0.0  ;;  %v1061_v11 = vpop.f32.mrf.mxu3 }
 0x216   : > { %1089 = vst [vmem:[%s2045_s24 + $0x30] sm:$0xff] %v1073_v43 }
 0x219   : > { %v975_v51 = vpop.f32.mrf.mxu2 }
 0x21a   : > { %v1041_v53 = vadd.f32 %v1040_v41, %v975_v51 }
 0x21c   : > { %v1074_v47 = vmax.f32 %v1041_v53, 0.0  ;;  %v1064_v16 = vpop.f32.mrf.mxu3 }
 0x21e   : > { %1090 = vst [vmem:[%s2045_s24 + $0x38] sm:$0xff] %v1074_v47 }
 0x221   : > { %v978_v55 = vpop.f32.mrf.mxu2 }
 0x222   : > { %v1044_v56 = vadd.f32 %v1043_v49, %v978_v55 }
 0x224   : > { %v1075_v52 = vmax.f32 %v1044_v56, 0.0 }
 0x226   : > { %1091 = vst [vmem:[%s2045_s24 + $0x40] sm:$0xff] %v1075_v52 }
 0x229   : > { %v981_v59 = vpop.f32.mrf.mxu2 }
 0x22a   : > { %v1047_v57 = vadd.f32 %v1046_v54, %v981_v59 }
 0x22c   : > { %v1076_v60 = vmax.f32 %v1047_v57, 0.0 }
 0x22e   : > { %1092 = vst [vmem:[%s2045_s24 + $0x48] sm:$0xff] %v1076_v60 }
 0x231   : > { %v984_v62 = vpop.f32.mrf.mxu2 }
 0x232   : > { %v1050_v0 = vadd.f32 %v1049_v58, %v984_v62 }
 0x234   : > { %v1077_v1 = vmax.f32 %v1050_v0, 0.0 }
 0x236   : > { %1093 = vst [vmem:[%s2045_s24 + $0x50] sm:$0xff] %v1077_v1 }
 0x239   : > { %v987_v3 = vpop.f32.mrf.mxu2 }
 0x23a   : > { %v1053_v4 = vadd.f32 %v1052_v63, %v987_v3 }
 0x23c   : > { %v1078_v8 = vmax.f32 %v1053_v4, 0.0 }
 0x23e   : > { %1094 = vst [vmem:[%s2045_s24 + $0x58] sm:$0xff] %v1078_v8 }
 0x241   : > { %v990_v5 = vpop.f32.mrf.mxu2 }
 0x242   : > { %v1056_v6 = vadd.f32 %v1055_v2, %v990_v5 }
 0x244   : > { %v1079_v7 = vmax.f32 %v1056_v6, 0.0 }
 0x246   : > { %1095 = vst [vmem:[%s2045_s24 + $0x60] sm:$0xff] %v1079_v7 }
 0x249   : > { %v993_v9 = vpop.f32.mrf.mxu2 }
 0x24a   : > { %v1059_v10 = vadd.f32 %v1058_v13, %v993_v9 }
 0x24c   : > { %v1080_v18 = vmax.f32 %v1059_v10, 0.0 }
 0x24e   : > { %1096 = vst [vmem:[%s2045_s24 + $0x68] sm:$0xff] %v1080_v18 }
 0x251   : > { %v996_v12 = vpop.f32.mrf.mxu2 }
 0x252   : > { %v1062_v31 = vadd.f32 %v1061_v11, %v996_v12 }
 0x254   : > { %v1081_v14 = vmax.f32 %v1062_v31, 0.0 }
 0x256   : > { %1097 = vst [vmem:[%s2045_s24 + $0x70] sm:$0xff] %v1081_v14 }
 0x259   : > { %v999_v45 = vpop.f32.mrf.mxu2 }
 0x25a   : > { %v1065_v17 = vadd.f32 %v1064_v16, %v999_v45 }
 0x25c   : > { %v1082_v19 = vmax.f32 %v1065_v17, 0.0 }
 0x25e   : > { %1098 = vst [vmem:[%s2045_s24 + $0x78] sm:$0xff] %v1082_v19 }
 0x25f   : > { %1679 = shalt.err (!%p1676_p0)
}
 0x260   : > { %s1762_s0 = smov 128   ;;  %s1763_s20 = smov 8  }
 0x261   : > { %1376 = dma.vmem_to_hbm [thread:$0]  (%p1875_p5), %s1113_s25, 2048, %s1115_s28, %s1100_s11, %s1762_s0, %s1762_s0, %s1763_s20  }
 0x262 PF: > { %s1129_s8 = sand.u32 1, %s1730_s18   ;;  %p1396_p3 = pnand %p1256_p11, %p1839_p6 }
 0x263   : > { %s1130_s27 = scalar_lea.sflag [#allocation5], %s1129_s8 }
 0x264   : > { %p1397_p7 = pneg %p1396_p3 }
 0x266   : > { %1725 = dma.done.wait (%p1397_p7), %s1130_s27, 2048  }
 0x267   : > { %1727 = vsyncadd (%p1397_p7), %s1130_s27, 4294965248  ;;  %s23_s23 = sadd.s32 1, %s1750_s23   ;;  %s2127_s6 = sld [smem:[#allocation19_spill]] }
 0x268   : > { %p20_p9 = scmp.ge.s32.totalorder %s23_s23, 4   ;;  %s2128_s20 = sld [smem:[#allocation22_spill]] }
 0x269   : > { %s2129_s15 = sld [smem:[#allocation21_spill]]  ;;  %s2130_s18 = smov %s1734_s19 }
 0x26a   : > { %s2132_s21 = smov %s1746_s22 }
 0x26b   :  { %22 = sbr.rel (!%p20_p9) target bundleno = 11 (0xb), region = 117 }
 0x26d   : > { %s2131_s19 = smov %s2127_s6 }
 0x26f   : > { %s2133_s22 = smov %s2129_s15 }
 0x270   :  { %1136 = vsyncpa [#allocation4], 1 }
 0x271   :  { %1138 = vsyncpa [#allocation4 + $0x1], 1 }
 0x272   :  { %1139 = vsyncpa [#allocation7], 1 }
 0x273   :  { %1140 = vsyncpa [#allocation11], 1 }
 0x274   :  { %1141 = vsyncpa [#allocation5], 1 }
 0x275   :  { %1143 = vsyncpa [#allocation5 + $0x1], 1 }

</bundles_post_ra>
